<compile_context>
chip_gen: v7x
topology: tpu7x:2x2x1
jax: 0.10.0
libtpu: 0.0.40
codegen_flags: <defaults>
</compile_context>

<pallas_src>
import jax
import jax.numpy as jnp
from jax.experimental import pallas as pl
from jax.experimental.pallas import tpu as pltpu


def _softplus(x):
    # numerically stable softplus (no overflow for large x)
    return jnp.maximum(x, 0.0) + jnp.log1p(jnp.exp(-jnp.abs(x)))


def _proj(w_t, x_t):
    """[H, D] x [D, N] -> [H, N].

    When D == 1 this is an outer product: use a VPU broadcast-multiply instead
    of a degenerate K=1 MXU matmul (perf review item #1)."""
    if w_t.shape[1] == 1:
        return w_t * x_t
    return jnp.dot(w_t, x_t, preferred_element_type=jnp.float32)


# ---------------------------------------------------------------------------
# Fused forward kernel (column / transposed layout everywhere):
#   encoder -> mean aggregate -> z_decoder (fused mu|sigma head) ->
#   z = eps*sigma + mu -> decoder (fused mu|sigma head), lane-dense output.
# ---------------------------------------------------------------------------
def np_forward_kernel(
    eps_ref,                                            # SMEM [1, 1]
    xc_t_ref, yc_t_ref,                                 # [x_dim, N], [y_dim, N]
    xt_t_ref,                                           # [x_dim, mt]  (blocked over M)
    ew1x_t_ref, ew1y_t_ref, eb1_t_ref, ew2_t_ref, eb2_t_ref,      # encoder
    zw1_t_ref, zb1_t_ref, zwms_t_ref, zbms_t_ref,                 # z_decoder
    dw1x_t_ref, dw1z_t_ref, db1_t_ref, dwms_t_ref, dbms_t_ref,    # decoder
    out_ref,                                            # [2*Y, mt] = [mu ; sigma]
    hconst_ref,                                         # VMEM scratch [H, 1]
):
    # ---- target-independent part: compute once, keep in VMEM scratch -------
    @pl.when(pl.program_id(0) == 0)
    def _():
        # encoder: r_i = MLP(concat(x_i, y_i)) via split W1 (broadcast, K==1)
        h = _proj(ew1x_t_ref[...], xc_t_ref[...]) + _proj(ew1y_t_ref[...], yc_t_ref[...])
        h = jnp.maximum(h + eb1_t_ref[...], 0.0)                               # [H, N]
        r_all = jnp.dot(ew2_t_ref[...], h,
                        preferred_element_type=jnp.float32) + eb2_t_ref[...]   # [R, N]

        # mean aggregator over context points as a matvec on the MXU
        n = r_all.shape[1]
        ones_over_n = jnp.full((n, 1), 1.0 / n, dtype=jnp.float32)
        r = jnp.dot(r_all, ones_over_n, preferred_element_type=jnp.float32)    # [R, 1]

        # z_decoder with fused [mu ; sigma] head
        hz = jnp.maximum(
            jnp.dot(zw1_t_ref[...], r, preferred_element_type=jnp.float32)
            + zb1_t_ref[...], 0.0)                                             # [H, 1]
        ms = jnp.dot(zwms_t_ref[...], hz,
                     preferred_element_type=jnp.float32) + zbms_t_ref[...]     # [2Z, 1]
        z_dim = ms.shape[0] // 2
        mu_z = ms[:z_dim, :]
        sigma_z = _softplus(ms[z_dim:, :])

        # reparameterisation with a single scalar eps (matches the reference:
        # z = Normal(0,1).sample() * sigma + mu)
        z = eps_ref[0, 0] * sigma_z + mu_z                                     # [Z, 1]

        # target-independent half of the decoder hidden pre-activation
        hconst_ref[...] = (
            jnp.dot(dw1z_t_ref[...], z, preferred_element_type=jnp.float32)
            + db1_t_ref[...])                                                  # [H, 1]

    # ---- per-target-tile decoder -------------------------------------------
    hd = jnp.maximum(_proj(dw1x_t_ref[...], xt_t_ref[...]) + hconst_ref[...], 0.0)   # [H, mt]
    out = jnp.dot(dwms_t_ref[...], hd,
                  preferred_element_type=jnp.float32) + dbms_t_ref[...]        # [2Y, mt]

    y_dim = out.shape[0] // 2
    out_ref[:y_dim, :] = out[:y_dim, :]              # mu rows: plain store
    out_ref[y_dim:, :] = _softplus(out[y_dim:, :])   # softplus only on sigma rows


def _pick_tile(m):
    # Lane-axis tile over target points. TODO(synk): prefer 1024 on v5e/v6e
    # (128 MiB VMEM) and ~512 on v7x (64 MiB) for production M.
    for t in (512, 256, 128):
        if m % t == 0:
            return t
    return m


# ---------------------------------------------------------------------------
# NeuralProcess.forward
# ---------------------------------------------------------------------------
@jax.jit
def neural_process_forward(params, x_context, y_context, x_target, eps):
    p = params
    M, x_dim = x_target.shape
    H = p["dec_b1_t"].shape[0]
    Y = p["dec_wms_t"].shape[0] // 2

    # column layout: points ride the lane axis
    xc_t = x_context.T            # [x_dim, N]
    yc_t = y_context.T            # [y_dim, N]
    xt_t = x_target.T             # [x_dim, M]

    mt = _pick_tile(M)
    grid = (pl.cdiv(M, mt),)

    vmem = pl.BlockSpec(memory_space=pltpu.MemorySpace.VMEM)
    smem = pl.BlockSpec(memory_space=pltpu.MemorySpace.SMEM)

    in_specs = (
        [smem]                                                    # eps
        + [vmem, vmem]                                            # xc_t, yc_t (fully resident)
        + [pl.BlockSpec((x_dim, mt), lambda i: (0, i))]           # xt_t tiled over lanes
        + [vmem] * 14                                             # all weights resident
    )

    out = pl.pallas_call(
        np_forward_kernel,
        out_shape=jax.ShapeDtypeStruct((2 * Y, M), jnp.float32),
        grid=grid,
        in_specs=in_specs,
        out_specs=pl.BlockSpec((2 * Y, mt), lambda i: (0, i)),
        scratch_shapes=[pltpu.VMEM((H, 1), jnp.float32)],
        compiler_params=pltpu.CompilerParams(
            # "arbitrary": the pl.when(pid==0) + persistent-scratch pattern
            # needs sequential grid execution on one core (see TODO above).
            dimension_semantics=("arbitrary",),
            vmem_limit_bytes=32 << 20,
        ),
    )(
        eps, xc_t, yc_t, xt_t,
        p["enc_w1x_t"], p["enc_w1y_t"], p["enc_b1_t"], p["enc_w2_t"], p["enc_b2_t"],
        p["zd_w1_t"], p["zd_b1_t"], p["zd_wms_t"], p["zd_bms_t"],
        p["dec_w1x_t"], p["dec_w1z_t"], p["dec_b1_t"], p["dec_wms_t"], p["dec_bms_t"],
    )

    mu = out[:Y, :].T[None]        # [1, M, Y]  (z-sample batch axis of 1)
    sigma = out[Y:, :].T[None]     # [1, M, Y]
    return mu, sigma


# ---------------------------------------------------------------------------
# Pure-JAX reference (row layout) for a numerical sanity check
# ---------------------------------------------------------------------------
def neural_process_forward_ref(params, x_context, y_context, x_target, eps):
    p = params
    h = jnp.maximum(
        x_context @ p["enc_w1x_t"].T + y_context @ p["enc_w1y_t"].T + p["enc_b1_t"].T, 0.0)
    r_all = h @ p["enc_w2_t"].T + p["enc_b2_t"].T
    r = jnp.mean(r_all, axis=0, keepdims=True)
    hz = jnp.maximum(r @ p["zd_w1_t"].T + p["zd_b1_t"].T, 0.0)
    ms = hz @ p["zd_wms_t"].T + p["zd_bms_t"].T
    Z = ms.shape[1] // 2
    mu_z, sigma_z = ms[:, :Z], jax.nn.softplus(ms[:, Z:])
    z = eps[0, 0] * sigma_z + mu_z
    hd = jnp.maximum(
        x_target @ p["dec_w1x_t"].T + z @ p["dec_w1z_t"].T + p["dec_b1_t"].T, 0.0)
    out = hd @ p["dec_wms_t"].T + p["dec_bms_t"].T
    Y = out.shape[1] // 2
    return out[:, :Y][None], jax.nn.softplus(out[:, Y:])[None]


# ---------------------------------------------------------------------------
# Deterministic parameter construction (weights stored transposed: [out, in])
# ---------------------------------------------------------------------------
def init_params(key, x_dim, y_dim, hidden, r_dim, z_dim):
    ks = jax.random.split(key, 12)
    s = 0.3

    def w(k, shape):
        return (s * jax.random.normal(k, shape)).astype(jnp.float32)

    return {
        # encoder: concat(x, y) -> hidden -> r_dim  (W1 split into x / y parts)
        "enc_w1x_t": w(ks[0], (hidden, x_dim)),
        "enc_w1y_t": w(ks[1], (hidden, y_dim)),
        "enc_b1_t": w(ks[2], (hidden, 1)),
        "enc_w2_t": w(ks[3], (r_dim, hidden)),
        "enc_b2_t": w(ks[4], (r_dim, 1)),
        # z_decoder: r_dim -> hidden -> fused [mu ; sigma] head (2*z_dim rows)
        "zd_w1_t": w(ks[5], (hidden, r_dim)),
        "zd_b1_t": w(ks[6], (hidden, 1)),
        "zd_wms_t": w(ks[7], (2 * z_dim, hidden)),
        "zd_bms_t": w(ks[8], (2 * z_dim, 1)),
        # decoder: concat(x, z) -> hidden -> fused [mu ; sigma] head (2*y_dim rows)
        "dec_w1x_t": w(ks[9], (hidden, x_dim)),
        "dec_w1z_t": w(ks[10], (hidden, z_dim)),
        "dec_b1_t": jnp.zeros((hidden, 1), jnp.float32),
        "dec_wms_t": w(ks[11], (2 * y_dim, hidden)),
        "dec_bms_t": jnp.zeros((2 * y_dim, 1), jnp.float32),
    }


if __name__ == "__main__":
    key = jax.random.PRNGKey(0)
    k_par, k_xc, k_yc, k_xt, k_eps = jax.random.split(key, 5)

    N, M = 8, 8                 # context / target points
    x_dim, y_dim = 1, 1
    hidden, r_dim, z_dim = 32, 32, 32

    params = init_params(k_par, x_dim, y_dim, hidden, r_dim, z_dim)

    x_context = jax.random.normal(k_xc, (N, x_dim), dtype=jnp.float32)
    y_context = jnp.sin(3.0 * x_context) + 0.1 * jax.random.normal(
        k_yc, (N, y_dim), dtype=jnp.float32)
    x_target = jax.random.normal(k_xt, (M, x_dim), dtype=jnp.float32)

    # torch.distributions.Normal(0,1).sample() -> scalar draw (host-side glue)
    eps = jax.random.normal(k_eps, (1, 1), dtype=jnp.float32)

    mu, sigma = neural_process_forward(params, x_context, y_context, x_target, eps)
    jax.block_until_ready((mu, sigma))

    mu_ref, sigma_ref = neural_process_forward_ref(params, x_context, y_context, x_target, eps)

    assert mu.shape == (1, M, y_dim) and sigma.shape == (1, M, y_dim)
    assert bool(jnp.all(jnp.isfinite(mu))) and bool(jnp.all(jnp.isfinite(sigma)))
    assert bool(jnp.all(sigma > 0.0))
    assert bool(jnp.allclose(mu, mu_ref, atol=2e-3, rtol=2e-3))
    assert bool(jnp.allclose(sigma, sigma_ref, atol=2e-3, rtol=2e-3))
    print("KERNEL_OK")
</pallas_src>

<mosaic_0001>
module attributes {stable_mosaic.version = 11 : i64} {
  func.func @np_forward_kernel(%arg0: i32, %arg1: memref<1x1xf32, #tpu.memory_space<smem>>, %arg2: memref<1x8xf32, #tpu.memory_space<vmem>>, %arg3: memref<1x8xf32, #tpu.memory_space<vmem>>, %arg4: memref<1x8xf32, #tpu.memory_space<vmem>>, %arg5: memref<32x1xf32, #tpu.memory_space<vmem>>, %arg6: memref<32x1xf32, #tpu.memory_space<vmem>>, %arg7: memref<32x1xf32, #tpu.memory_space<vmem>>, %arg8: memref<32x32xf32, #tpu.memory_space<vmem>>, %arg9: memref<32x1xf32, #tpu.memory_space<vmem>>, %arg10: memref<32x32xf32, #tpu.memory_space<vmem>>, %arg11: memref<32x1xf32, #tpu.memory_space<vmem>>, %arg12: memref<64x32xf32, #tpu.memory_space<vmem>>, %arg13: memref<64x1xf32, #tpu.memory_space<vmem>>, %arg14: memref<32x1xf32, #tpu.memory_space<vmem>>, %arg15: memref<32x32xf32, #tpu.memory_space<vmem>>, %arg16: memref<32x1xf32, #tpu.memory_space<vmem>>, %arg17: memref<2x32xf32, #tpu.memory_space<vmem>>, %arg18: memref<2x1xf32, #tpu.memory_space<vmem>>, %arg19: memref<2x8xf32, #tpu.memory_space<vmem>>, %arg20: memref<32x1xf32, #tpu.memory_space<vmem>>) attributes {dimension_semantics = [#tpu.dimension_semantics<arbitrary>], iteration_bounds = array<i64: 1>, scalar_prefetch = 0 : i64, scratch_operands = 1 : i64, tpu.core_type = #tpu.core_type<tc>, window_params = [{transform_indices = @transform_0, window_bounds = array<i64: 1, 1>}, {pipeline_mode = #tpu.pipeline_mode<synchronous>, transform_indices = @transform_1, window_bounds = array<i64: 1, 8>}, {pipeline_mode = #tpu.pipeline_mode<synchronous>, transform_indices = @transform_2, window_bounds = array<i64: 1, 8>}, {transform_indices = @transform_3, window_bounds = array<i64: 1, 8>}, {pipeline_mode = #tpu.pipeline_mode<synchronous>, transform_indices = @transform_4, window_bounds = array<i64: 32, 1>}, {pipeline_mode = #tpu.pipeline_mode<synchronous>, transform_indices = @transform_5, window_bounds = array<i64: 32, 1>}, {pipeline_mode = #tpu.pipeline_mode<synchronous>, transform_indices = @transform_6, window_bounds = array<i64: 32, 1>}, {pipeline_mode = #tpu.pipeline_mode<synchronous>, transform_indices = @transform_7, window_bounds = array<i64: 32, 32>}, {pipeline_mode = #tpu.pipeline_mode<synchronous>, transform_indices = @transform_8, window_bounds = array<i64: 32, 1>}, {pipeline_mode = #tpu.pipeline_mode<synchronous>, transform_indices = @transform_9, window_bounds = array<i64: 32, 32>}, {pipeline_mode = #tpu.pipeline_mode<synchronous>, transform_indices = @transform_10, window_bounds = array<i64: 32, 1>}, {pipeline_mode = #tpu.pipeline_mode<synchronous>, transform_indices = @transform_11, window_bounds = array<i64: 64, 32>}, {pipeline_mode = #tpu.pipeline_mode<synchronous>, transform_indices = @transform_12, window_bounds = array<i64: 64, 1>}, {pipeline_mode = #tpu.pipeline_mode<synchronous>, transform_indices = @transform_13, window_bounds = array<i64: 32, 1>}, {pipeline_mode = #tpu.pipeline_mode<synchronous>, transform_indices = @transform_14, window_bounds = array<i64: 32, 32>}, {pipeline_mode = #tpu.pipeline_mode<synchronous>, transform_indices = @transform_15, window_bounds = array<i64: 32, 1>}, {pipeline_mode = #tpu.pipeline_mode<synchronous>, transform_indices = @transform_16, window_bounds = array<i64: 2, 32>}, {pipeline_mode = #tpu.pipeline_mode<synchronous>, transform_indices = @transform_17, window_bounds = array<i64: 2, 1>}, {transform_indices = @transform_18, window_bounds = array<i64: 2, 8>}]} {
    %c0_i32 = arith.constant 0 : i32
    %0 = arith.cmpi eq, %arg0, %c0_i32 : i32
    %1 = arith.extui %0 : i1 to i32
    %c0_i32_0 = arith.constant 0 : i32
    %2 = arith.cmpi ne, %1, %c0_i32_0 : i32
    scf.if %2 {
      %c0_16 = arith.constant 0 : index
      %c0_17 = arith.constant 0 : index
      %30 = vector.load %arg5[%c0_16, %c0_17] : memref<32x1xf32, #tpu.memory_space<vmem>>, vector<32x1xf32>
      %c0_18 = arith.constant 0 : index
      %c0_19 = arith.constant 0 : index
      %31 = vector.load %arg2[%c0_18, %c0_19] : memref<1x8xf32, #tpu.memory_space<vmem>>, vector<1x8xf32>
      %32 = vector.broadcast %30 : vector<32x1xf32> to vector<32x8xf32>
      %33 = vector.broadcast %31 : vector<1x8xf32> to vector<32x8xf32>
      %34 = arith.mulf %32, %33 : vector<32x8xf32>
      %c0_20 = arith.constant 0 : index
      %c0_21 = arith.constant 0 : index
      %35 = vector.load %arg6[%c0_20, %c0_21] : memref<32x1xf32, #tpu.memory_space<vmem>>, vector<32x1xf32>
      %c0_22 = arith.constant 0 : index
      %c0_23 = arith.constant 0 : index
      %36 = vector.load %arg3[%c0_22, %c0_23] : memref<1x8xf32, #tpu.memory_space<vmem>>, vector<1x8xf32>
      %37 = vector.broadcast %35 : vector<32x1xf32> to vector<32x8xf32>
      %38 = vector.broadcast %36 : vector<1x8xf32> to vector<32x8xf32>
      %39 = arith.mulf %37, %38 : vector<32x8xf32>
      %40 = arith.addf %34, %39 : vector<32x8xf32>
      %c0_24 = arith.constant 0 : index
      %c0_25 = arith.constant 0 : index
      %41 = vector.load %arg7[%c0_24, %c0_25] : memref<32x1xf32, #tpu.memory_space<vmem>>, vector<32x1xf32>
      %42 = vector.broadcast %41 : vector<32x1xf32> to vector<32x8xf32>
      %43 = arith.addf %40, %42 : vector<32x8xf32>
      %cst_26 = arith.constant 0.000000e+00 : f32
      %44 = vector.broadcast %cst_26 : f32 to vector<32x8xf32>
      %45 = arith.maximumf %43, %44 : vector<32x8xf32>
      %c0_27 = arith.constant 0 : index
      %c0_28 = arith.constant 0 : index
      %46 = vector.load %arg8[%c0_27, %c0_28] : memref<32x32xf32, #tpu.memory_space<vmem>>, vector<32x32xf32>
      %cst_29 = arith.constant dense<0.000000e+00> : vector<32x8xf32>
      %47 = tpu.matmul %46, %45, %cst_29 {dimension_numbers = #tpu.dot_dimension_numbers<[1], [0], [0], [1], [0, 0, 1, 1], [], []>} : vector<32x32xf32>, vector<32x8xf32>, vector<32x8xf32> -> vector<32x8xf32>
      %c0_30 = arith.constant 0 : index
      %c0_31 = arith.constant 0 : index
      %48 = vector.load %arg9[%c0_30, %c0_31] : memref<32x1xf32, #tpu.memory_space<vmem>>, vector<32x1xf32>
      %49 = vector.broadcast %48 : vector<32x1xf32> to vector<32x8xf32>
      %50 = arith.addf %47, %49 : vector<32x8xf32>
      %cst_32 = arith.constant 1.250000e-01 : f32
      %51 = vector.broadcast %cst_32 : f32 to vector<8x1xf32>
      %cst_33 = arith.constant dense<0.000000e+00> : vector<32x1xf32>
      %52 = tpu.matmul %50, %51, %cst_33 {dimension_numbers = #tpu.dot_dimension_numbers<[1], [0], [0], [1], [0, 0, 1, 1], [], []>} : vector<32x8xf32>, vector<8x1xf32>, vector<32x1xf32> -> vector<32x1xf32>
      %c0_34 = arith.constant 0 : index
      %c0_35 = arith.constant 0 : index
      %53 = vector.load %arg10[%c0_34, %c0_35] : memref<32x32xf32, #tpu.memory_space<vmem>>, vector<32x32xf32>
      %cst_36 = arith.constant dense<0.000000e+00> : vector<32x1xf32>
      %54 = tpu.matmul %53, %52, %cst_36 {dimension_numbers = #tpu.dot_dimension_numbers<[1], [0], [0], [1], [0, 0, 1, 1], [], []>} : vector<32x32xf32>, vector<32x1xf32>, vector<32x1xf32> -> vector<32x1xf32>
      %c0_37 = arith.constant 0 : index
      %c0_38 = arith.constant 0 : index
      %55 = vector.load %arg11[%c0_37, %c0_38] : memref<32x1xf32, #tpu.memory_space<vmem>>, vector<32x1xf32>
      %56 = arith.addf %54, %55 : vector<32x1xf32>
      %cst_39 = arith.constant 0.000000e+00 : f32
      %57 = vector.broadcast %cst_39 : f32 to vector<32x1xf32>
      %58 = arith.maximumf %56, %57 : vector<32x1xf32>
      %c0_40 = arith.constant 0 : index
      %c0_41 = arith.constant 0 : index
      %59 = vector.load %arg12[%c0_40, %c0_41] : memref<64x32xf32, #tpu.memory_space<vmem>>, vector<64x32xf32>
      %cst_42 = arith.constant dense<0.000000e+00> : vector<64x1xf32>
      %60 = tpu.matmul %59, %58, %cst_42 {dimension_numbers = #tpu.dot_dimension_numbers<[1], [0], [0], [1], [0, 0, 1, 1], [], []>} : vector<64x32xf32>, vector<32x1xf32>, vector<64x1xf32> -> vector<64x1xf32>
      %c0_43 = arith.constant 0 : index
      %c0_44 = arith.constant 0 : index
      %61 = vector.load %arg13[%c0_43, %c0_44] : memref<64x1xf32, #tpu.memory_space<vmem>>, vector<64x1xf32>
      %62 = arith.addf %60, %61 : vector<64x1xf32>
      %63 = vector.extract_strided_slice %62 {offsets = [0, 0], sizes = [32, 1], strides = [1, 1]} : vector<64x1xf32> to vector<32x1xf32>
      %64 = vector.extract_strided_slice %62 {offsets = [32, 0], sizes = [32, 1], strides = [1, 1]} : vector<64x1xf32> to vector<32x1xf32>
      %cst_45 = arith.constant 0.000000e+00 : f32
      %65 = vector.broadcast %cst_45 : f32 to vector<32x1xf32>
      %66 = arith.maximumf %64, %65 : vector<32x1xf32>
      %67 = math.absf %64 : vector<32x1xf32>
      %cst_46 = arith.constant 0.000000e+00 : f32
      %68 = vector.broadcast %cst_46 : f32 to vector<32x1xf32>
      %69 = arith.subf %68, %67 : vector<32x1xf32>
      %70 = math.exp %69 : vector<32x1xf32>
      %71 = math.log1p %70 : vector<32x1xf32>
      %72 = arith.addf %66, %71 : vector<32x1xf32>
      %c0_47 = arith.constant 0 : index
      %c0_48 = arith.constant 0 : index
      %73 = memref.load %arg1[%c0_47, %c0_48] : memref<1x1xf32, #tpu.memory_space<smem>>
      %74 = vector.broadcast %73 : f32 to vector<32x1xf32>
      %75 = arith.mulf %74, %72 : vector<32x1xf32>
      %76 = arith.addf %75, %63 : vector<32x1xf32>
      %c0_49 = arith.constant 0 : index
      %c0_50 = arith.constant 0 : index
      %77 = vector.load %arg15[%c0_49, %c0_50] : memref<32x32xf32, #tpu.memory_space<vmem>>, vector<32x32xf32>
      %cst_51 = arith.constant dense<0.000000e+00> : vector<32x1xf32>
      %78 = tpu.matmul %77, %76, %cst_51 {dimension_numbers = #tpu.dot_dimension_numbers<[1], [0], [0], [1], [0, 0, 1, 1], [], []>} : vector<32x32xf32>, vector<32x1xf32>, vector<32x1xf32> -> vector<32x1xf32>
      %c0_52 = arith.constant 0 : index
      %c0_53 = arith.constant 0 : index
      %79 = vector.load %arg16[%c0_52, %c0_53] : memref<32x1xf32, #tpu.memory_space<vmem>>, vector<32x1xf32>
      %80 = arith.addf %78, %79 : vector<32x1xf32>
      %c0_54 = arith.constant 0 : index
      %c0_55 = arith.constant 0 : index
      %81 = vector.load %arg20[%c0_54, %c0_55] : memref<32x1xf32, #tpu.memory_space<vmem>>, vector<32x1xf32>
      tpu.vector_store %arg20[%c0_54, %c0_55], %80 {strides = array<i32>} : memref<32x1xf32, #tpu.memory_space<vmem>>, vector<32x1xf32>,
    } else {
    }
    %c0 = arith.constant 0 : index
    %c0_1 = arith.constant 0 : index
    %3 = vector.load %arg14[%c0, %c0_1] : memref<32x1xf32, #tpu.memory_space<vmem>>, vector<32x1xf32>
    %c0_2 = arith.constant 0 : index
    %c0_3 = arith.constant 0 : index
    %4 = vector.load %arg4[%c0_2, %c0_3] : memref<1x8xf32, #tpu.memory_space<vmem>>, vector<1x8xf32>
    %5 = vector.broadcast %3 : vector<32x1xf32> to vector<32x8xf32>
    %6 = vector.broadcast %4 : vector<1x8xf32> to vector<32x8xf32>
    %7 = arith.mulf %5, %6 : vector<32x8xf32>
    %c0_4 = arith.constant 0 : index
    %c0_5 = arith.constant 0 : index
    %8 = vector.load %arg20[%c0_4, %c0_5] : memref<32x1xf32, #tpu.memory_space<vmem>>, vector<32x1xf32>
    %9 = vector.broadcast %8 : vector<32x1xf32> to vector<32x8xf32>
    %10 = arith.addf %7, %9 : vector<32x8xf32>
    %cst = arith.constant 0.000000e+00 : f32
    %11 = vector.broadcast %cst : f32 to vector<32x8xf32>
    %12 = arith.maximumf %10, %11 : vector<32x8xf32>
    %c0_6 = arith.constant 0 : index
    %c0_7 = arith.constant 0 : index
    %13 = vector.load %arg17[%c0_6, %c0_7] : memref<2x32xf32, #tpu.memory_space<vmem>>, vector<2x32xf32>
    %cst_8 = arith.constant dense<0.000000e+00> : vector<2x8xf32>
    %14 = tpu.matmul %13, %12, %cst_8 {dimension_numbers = #tpu.dot_dimension_numbers<[1], [0], [0], [1], [0, 0, 1, 1], [], []>} : vector<2x32xf32>, vector<32x8xf32>, vector<2x8xf32> -> vector<2x8xf32>
    %c0_9 = arith.constant 0 : index
    %c0_10 = arith.constant 0 : index
    %15 = vector.load %arg18[%c0_9, %c0_10] : memref<2x1xf32, #tpu.memory_space<vmem>>, vector<2x1xf32>
    %16 = vector.broadcast %15 : vector<2x1xf32> to vector<2x8xf32>
    %17 = arith.addf %14, %16 : vector<2x8xf32>
    %18 = vector.extract_strided_slice %17 {offsets = [0, 0], sizes = [1, 8], strides = [1, 1]} : vector<2x8xf32> to vector<1x8xf32>
    %c0_11 = arith.constant 0 : index
    %c0_12 = arith.constant 0 : index
    %19 = vector.load %arg19[%c0_11, %c0_12] : memref<2x8xf32, #tpu.memory_space<vmem>>, vector<1x8xf32>
    tpu.vector_store %arg19[%c0_11, %c0_12], %18 {strides = array<i32>} : memref<2x8xf32, #tpu.memory_space<vmem>>, vector<1x8xf32>,
    %20 = vector.extract_strided_slice %17 {offsets = [1, 0], sizes = [1, 8], strides = [1, 1]} : vector<2x8xf32> to vector<1x8xf32>
    %cst_13 = arith.constant 0.000000e+00 : f32
    %21 = vector.broadcast %cst_13 : f32 to vector<1x8xf32>
    %22 = arith.maximumf %20, %21 : vector<1x8xf32>
    %23 = math.absf %20 : vector<1x8xf32>
    %cst_14 = arith.constant 0.000000e+00 : f32
    %24 = vector.broadcast %cst_14 : f32 to vector<1x8xf32>
    %25 = arith.subf %24, %23 : vector<1x8xf32>
    %26 = math.exp %25 : vector<1x8xf32>
    %27 = math.log1p %26 : vector<1x8xf32>
    %28 = arith.addf %22, %27 : vector<1x8xf32>
    %c1 = arith.constant 1 : index
    %c0_15 = arith.constant 0 : index
    %29 = vector.load %arg19[%c1, %c0_15] : memref<2x8xf32, #tpu.memory_space<vmem>>, vector<1x8xf32>
    tpu.vector_store %arg19[%c1, %c0_15], %28 {strides = array<i32>} : memref<2x8xf32, #tpu.memory_space<vmem>>, vector<1x8xf32>,
    return
  }
  func.func @transform_0(%arg0: i32) -> (i32, i32) {
    %c0_i32 = arith.constant 0 : i32
    %c0_i32_0 = arith.constant 0 : i32
    %c0_i32_1 = arith.constant 0 : i32
    return %c0_i32, %c0_i32_0 : i32, i32
  }
  func.func @transform_1(%arg0: i32) -> (i32, i32) {
    %c0_i32 = arith.constant 0 : i32
    %c0_i32_0 = arith.constant 0 : i32
    %c0_i32_1 = arith.constant 0 : i32
    return %c0_i32, %c0_i32_0 : i32, i32
  }
  func.func @transform_2(%arg0: i32) -> (i32, i32) {
    %c0_i32 = arith.constant 0 : i32
    %c0_i32_0 = arith.constant 0 : i32
    %c0_i32_1 = arith.constant 0 : i32
    return %c0_i32, %c0_i32_0 : i32, i32
  }
  func.func @transform_3(%arg0: i32) -> (i32, i32) {
    %c0_i32 = arith.constant 0 : i32
    %c0_i32_0 = arith.constant 0 : i32
    return %c0_i32, %arg0 : i32, i32
  }
  func.func @transform_4(%arg0: i32) -> (i32, i32) {
    %c0_i32 = arith.constant 0 : i32
    %c0_i32_0 = arith.constant 0 : i32
    %c0_i32_1 = arith.constant 0 : i32
    return %c0_i32, %c0_i32_0 : i32, i32
  }
  func.func @transform_5(%arg0: i32) -> (i32, i32) {
    %c0_i32 = arith.constant 0 : i32
    %c0_i32_0 = arith.constant 0 : i32
    %c0_i32_1 = arith.constant 0 : i32
    return %c0_i32, %c0_i32_0 : i32, i32
  }
  func.func @transform_6(%arg0: i32) -> (i32, i32) {
    %c0_i32 = arith.constant 0 : i32
    %c0_i32_0 = arith.constant 0 : i32
    %c0_i32_1 = arith.constant 0 : i32
    return %c0_i32, %c0_i32_0 : i32, i32
  }
  func.func @transform_7(%arg0: i32) -> (i32, i32) {
    %c0_i32 = arith.constant 0 : i32
    %c0_i32_0 = arith.constant 0 : i32
    %c0_i32_1 = arith.constant 0 : i32
    return %c0_i32, %c0_i32_0 : i32, i32
  }
  func.func @transform_8(%arg0: i32) -> (i32, i32) {
    %c0_i32 = arith.constant 0 : i32
    %c0_i32_0 = arith.constant 0 : i32
    %c0_i32_1 = arith.constant 0 : i32
    return %c0_i32, %c0_i32_0 : i32, i32
  }
  func.func @transform_9(%arg0: i32) -> (i32, i32) {
    %c0_i32 = arith.constant 0 : i32
    %c0_i32_0 = arith.constant 0 : i32
    %c0_i32_1 = arith.constant 0 : i32
    return %c0_i32, %c0_i32_0 : i32, i32
  }
  func.func @transform_10(%arg0: i32) -> (i32, i32) {
    %c0_i32 = arith.constant 0 : i32
    %c0_i32_0 = arith.constant 0 : i32
    %c0_i32_1 = arith.constant 0 : i32
    return %c0_i32, %c0_i32_0 : i32, i32
  }
  func.func @transform_11(%arg0: i32) -> (i32, i32) {
    %c0_i32 = arith.constant 0 : i32
    %c0_i32_0 = arith.constant 0 : i32
    %c0_i32_1 = arith.constant 0 : i32
    return %c0_i32, %c0_i32_0 : i32, i32
  }
  func.func @transform_12(%arg0: i32) -> (i32, i32) {
    %c0_i32 = arith.constant 0 : i32
    %c0_i32_0 = arith.constant 0 : i32
    %c0_i32_1 = arith.constant 0 : i32
    return %c0_i32, %c0_i32_0 : i32, i32
  }
  func.func @transform_13(%arg0: i32) -> (i32, i32) {
    %c0_i32 = arith.constant 0 : i32
    %c0_i32_0 = arith.constant 0 : i32
    %c0_i32_1 = arith.constant 0 : i32
    return %c0_i32, %c0_i32_0 : i32, i32
  }
  func.func @transform_14(%arg0: i32) -> (i32, i32) {
    %c0_i32 = arith.constant 0 : i32
    %c0_i32_0 = arith.constant 0 : i32
    %c0_i32_1 = arith.constant 0 : i32
    return %c0_i32, %c0_i32_0 : i32, i32
  }
  func.func @transform_15(%arg0: i32) -> (i32, i32) {
    %c0_i32 = arith.constant 0 : i32
    %c0_i32_0 = arith.constant 0 : i32
    %c0_i32_1 = arith.constant 0 : i32
    return %c0_i32, %c0_i32_0 : i32, i32
  }
  func.func @transform_16(%arg0: i32) -> (i32, i32) {
    %c0_i32 = arith.constant 0 : i32
    %c0_i32_0 = arith.constant 0 : i32
    %c0_i32_1 = arith.constant 0 : i32
    return %c0_i32, %c0_i32_0 : i32, i32
  }
  func.func @transform_17(%arg0: i32) -> (i32, i32) {
    %c0_i32 = arith.constant 0 : i32
    %c0_i32_0 = arith.constant 0 : i32
    %c0_i32_1 = arith.constant 0 : i32
    return %c0_i32, %c0_i32_0 : i32, i32
  }
  func.func @transform_18(%arg0: i32) -> (i32, i32) {
    %c0_i32 = arith.constant 0 : i32
    %c0_i32_0 = arith.constant 0 : i32
    return %c0_i32, %arg0 : i32, i32
  }
}

</mosaic_0001>

<bundles_post_ra>
// kernel: neural_process_forward.1
= control target key start
LH: loop header
LB: loop body
LE: loop exit
PB: predicated region body
PF: predicated region fallthrough
CT: control target
= control target key end

     0   :  { %v1219_v0 = vmov 0   ;;  %vm198_vm0 = vcmask 261120   ;;  %v1220_v61 = vmov 0.125   ;;  %vm296_vm1 = vcmask 64512   ;;  %s1560_s5 = inlined_call_operand.vmem [shape: f32[32,1], index: 5, kind: input, shape index: {}]   ;;  %s1561_s4 = inlined_call_operand.vmem [shape: f32[32,1], index: 4, kind: input, shape index: {}]   ;;  %s1562_s6 = inlined_call_operand.vmem [shape: f32[32,1], index: 6, kind: input, shape index: {}]   ;;  %s1563_s8 = inlined_call_operand.vmem [shape: f32[32,1], index: 8, kind: input, shape index: {}]   ;;  %s1564_s13 = inlined_call_operand.vmem [shape: f32[32,1], index: 13, kind: input, shape index: {}]   ;;  %s1565_s7 = inlined_call_operand.vmem [shape: f32[32,32], index: 7, kind: input, shape index: {}]   ;;  %s1566_s2 = inlined_call_operand.vmem [shape: f32[1,8], index: 2, kind: input, shape index: {}]   ;;  %s1567_s1 = inlined_call_operand.vmem [shape: f32[1,8], index: 1, kind: input, shape index: {}]   ;;  %s1568_s9 = inlined_call_operand.vmem [shape: f32[32,32], index: 9, kind: input, shape index: {}]   ;;  %s1569_s11 = inlined_call_operand.vmem [shape: f32[64,32], index: 11, kind: input, shape index: {}]   ;;  %s1570_s10 = inlined_call_operand.vmem [shape: f32[32,1], index: 10, kind: input, shape index: {}]   ;;  %s1571_s14 = inlined_call_operand.vmem [shape: f32[32,32], index: 14, kind: input, shape index: {}]   ;;  %s1572_s12 = inlined_call_operand.vmem [shape: f32[64,1], index: 12, kind: input, shape index: {}]   ;;  %s1573_s0 = inlined_call_operand.<no memory space> [shape: f32[1,1], index: 0, kind: input, shape index: {}]   ;;  %s1574_s15 = inlined_call_operand.vmem [shape: f32[32,1], index: 15, kind: input, shape index: {}]   ;;  %s1575_s17 = inlined_call_operand.vmem [shape: f32[2,1], index: 17, kind: input, shape index: {}]   ;;  %s1576_s3 = inlined_call_operand.vmem [shape: f32[1,8], index: 3, kind: input, shape index: {}]   ;;  %s1577_s16 = inlined_call_operand.vmem [shape: f32[2,32], index: 16, kind: input, shape index: {}]   ;;  %s1578_s18 = inlined_call_operand.vmem [shape: f32[2,8], index: 18, kind: output, shape index: {}]  }
   0x1   :  { %1582 = sst [smem:[#allocation4_spill]] %s1560_s5  ;;  %1198 = vset.pattern.permute.xlu1 %v1219_v0  ;;  %1197 = vset.pattern.permute.xlu0 %v1219_v0  ;;  %v175_v13 = vld [vmem:[%s1563_s8 + $0x8] sm:$0xff]  ;;  %v174_v14 = vld [vmem:[%s1563_s8] sm:$0xff]  ;;  %v177_v15 = vld [vmem:[%s1563_s8 + $0x18] sm:$0xff]  ;;  %vm823_vm6 = vcmask 7168   ;;  %vm1222_vm7 = vmmov 0  }
   0x2   :  { %1583 = sst [smem:[#allocation5_spill]] %s1561_s4  ;;  %s1585_s29 = sld [smem:[#allocation4_spill]]  ;;  %v176_v16 = vld [vmem:[%s1563_s8 + $0x10] sm:$0xff]  ;;  %v170_v17 = vld [vmem:[%s1565_s7] sm:$0xff]  ;;  %v829_v18 = vld [vmem:[%s1564_s13 + $0x8] sm:$0xff]  ;;  %1087 = vmatprep.subr.mxu1 %v1220_v61  ;;  %vm976_vm8 = vcmask 57344  }
   0x3   :  { %1584 = sst [smem:[#allocation6_spill]] %s1562_s6  ;;  %s1586_s19 = sld [smem:[#allocation5_spill]]  ;;  %v828_v19 = vld [vmem:[%s1564_s13] sm:$0xff]  ;;  %1081 = vmatprep.mubr.msk.f32.mxu0 %vm198_vm0, %v170_v17  ;;  %v831_v20 = vld [vmem:[%s1564_s13 + $0x18] sm:$0xff]  ;;  %v830_v21 = vld [vmem:[%s1564_s13 + $0x10] sm:$0xff]  ;;  %1088 = vmatpush3.msra.mxu1 %v1220_v61  ;;  %vm993_vm10 = vcmask 58369  }
   0x4   :  { %s1587_s20 = sld [smem:[#allocation6_spill]]  ;;  %v1000_v26 = vld [vmem:[%s1566_s2] ss:$0 sm:$0xff]  ;;  %v171_v58 = vld [vmem:[%s1565_s7 + $0x8] sm:$0xff]  ;;  %v172_v59 = vld [vmem:[%s1565_s7 + $0x10] sm:$0xff] }
   0x5   :  { %v999_v27 = vld [vmem:[%s1567_s1] ss:$0 sm:$0xff]  ;;  %v173_v60 = vld [vmem:[%s1565_s7 + $0x18] sm:$0xff]  ;;  %v395_v17 = vld [vmem:[%s1568_s9 + $0x8] sm:$0xff] }
   0x8   :  { %v99_v1 = vld [vmem:[%s1585_s29] sm:$0xff]  ;;  %v100_v3 = vld [vmem:[%s1585_s29 + $0x8] sm:$0xff]  ;;  %v102_v7 = vld [vmem:[%s1585_s29 + $0x18] sm:$0xff] }
   0x9   :  { %v64_v2 = vld [vmem:[%s1586_s19] sm:$0xff]  ;;  %106 = vperm.xlu1 %1198, %v99_v1   ;;  %v65_v4 = vld [vmem:[%s1586_s19 + $0x8] sm:$0xff]  ;;  %v67_v5 = vld [vmem:[%s1586_s19 + $0x18] sm:$0xff] }
   0xa   :  { %71 = vperm.xlu0 %1197, %v64_v2   ;;  %v66_v6 = vld [vmem:[%s1586_s19 + $0x10] sm:$0xff]  ;;  %v139_v9 = vld [vmem:[%s1587_s20 + $0x8] sm:$0xff]  ;;  %v138_v10 = vld [vmem:[%s1587_s20] sm:$0xff] }
   0xb   :  { %v101_v8 = vld [vmem:[%s1585_s29 + $0x10] sm:$0xff]  ;;  %v141_v11 = vld [vmem:[%s1587_s20 + $0x18] sm:$0xff] }
   0xc   :  { %v140_v12 = vld [vmem:[%s1587_s20 + $0x10] sm:$0xff] }
   0xd   :  { %111 = vperm.xlu1 %1198, %v100_v3  }
   0xe   :  { %76 = vperm.xlu0 %1197, %v65_v4  }
  0x11   :  { %86 = vperm.xlu1 %1198, %v67_v5  }
  0x12   :  { %81 = vperm.xlu0 %1197, %v66_v6  }
  0x15   :  { %121 = vperm.xlu1 %1198, %v102_v7  }
  0x16   :  { %116 = vperm.xlu0 %1197, %v101_v8  }
  0x19   :  { %149 = vperm.xlu1 %1198, %v139_v9  }
  0x1a   :  { %144 = vperm.xlu0 %1197, %v138_v10   ;;  %v394_v10 = vld [vmem:[%s1568_s9] sm:$0xff] }
  0x1d   :  { %159 = vperm.xlu1 %1198, %v141_v11  }
  0x1e   :  { %154 = vperm.xlu0 %1197, %v140_v12  }
  0x21   :  { %185 = vperm.xlu1 %1198, %v175_v13  }
  0x22   :  { %180 = vperm.xlu0 %1197, %v174_v14  }
  0x25   :  { %195 = vperm.xlu1 %1198, %v177_v15  }
  0x26   :  { %190 = vperm.xlu0 %1197, %v176_v16  }
  0x29   :  { %840 = vperm.xlu1 %1198, %v829_v18   ;;  %v396_v18 = vld [vmem:[%s1568_s9 + $0x10] sm:$0xff] }
  0x2a   :  { %835 = vperm.xlu0 %1197, %v828_v19   ;;  %v397_v19 = vld [vmem:[%s1568_s9 + $0x18] sm:$0xff] }
  0x2d   :  { %850 = vperm.xlu1 %1198, %v831_v20   ;;  %v503_v20 = vld [vmem:[%s1569_s11] sm:$0xff] }
  0x2e   :  { %845 = vperm.xlu0 %1197, %v830_v21   ;;  %v399_v21 = vld [vmem:[%s1570_s10 + $0x8] sm:$0xff] }
  0x88   :  { %v107_v22 = vpop.permute.xlu1 %106 }
  0x89   :  { %v72_v23 = vpop.permute.xlu0 %71  ;;  %v130_v30 = vmul.f32 %v1000_v26, %v107_v22  ;;  %v398_v22 = vld [vmem:[%s1570_s10] sm:$0xff] }
  0x8a   :  { %v95_v31 = vmul.f32 %v999_v27, %v72_v23 }
  0x8c   :  { %v112_v24 = vpop.permute.xlu1 %111  ;;  %v134_v39 = vadd.f32 %v130_v30, %v95_v31 }
  0x8d   :  { %v77_v25 = vpop.permute.xlu0 %76  ;;  %v131_v32 = vmul.f32 %v1000_v26, %v112_v24 }
  0x8e   :  { %v96_v33 = vmul.f32 %v999_v27, %v77_v25 }
  0x90   :  { %v87_v28 = vpop.permute.xlu1 %86  ;;  %v135_v38 = vadd.f32 %v131_v32, %v96_v33 }
  0x91   :  { %v82_v29 = vpop.permute.xlu0 %81  ;;  %v98_v42 = vmul.f32 %v999_v27, %v87_v28 }
  0x92   :  { %v97_v43 = vmul.f32 %v999_v27, %v82_v29  ;;  %v401_v27 = vld [vmem:[%s1570_s10 + $0x18] sm:$0xff]  ;;  %v400_v29 = vld [vmem:[%s1570_s10 + $0x10] sm:$0xff] }
  0x94   :  { %v122_v34 = vpop.permute.xlu1 %121 }
  0x95   :  { %v117_v35 = vpop.permute.xlu0 %116  ;;  %v133_v36 = vmul.f32 %v1000_v26, %v122_v34 }
  0x96   :  { %v132_v37 = vmul.f32 %v1000_v26, %v117_v35 }
  0x97   :  { %v137_v48 = vadd.f32 %v133_v36, %v98_v42  ;;  %v507_v42 = vld [vmem:[%s1569_s11 + $0x20] sm:$0xff] }
  0x98   :  { %v150_v40 = vpop.permute.xlu1 %149  ;;  %v136_v49 = vadd.f32 %v132_v37, %v97_v43  ;;  %v508_v43 = vld [vmem:[%s1569_s11 + $0x28] sm:$0xff] }
  0x99   :  { %v145_v41 = vpop.permute.xlu0 %144  ;;  %v163_v44 = vadd.f32 %v150_v40, %v135_v38  ;;  %v505_v40 = vld [vmem:[%s1569_s11 + $0x10] sm:$0xff] }
  0x9a   :  { %v162_v45 = vadd.f32 %v145_v41, %v134_v39  ;;  %v504_v39 = vld [vmem:[%s1569_s11 + $0x8] sm:$0xff]  ;;  %v506_v41 = vld [vmem:[%s1569_s11 + $0x18] sm:$0xff] }
  0x9b   :  { %v167_v46 = vmax.f32 %v163_v44, 0.0  ;;  %v509_v44 = vld [vmem:[%s1569_s11 + $0x30] sm:$0xff] }
  0x9c   :  { %v166_v47 = vmax.f32 %v162_v45, 0.0  ;;  %v160_v50 = vpop.permute.xlu1 %159  ;;  %v510_v45 = vld [vmem:[%s1569_s11 + $0x38] sm:$0xff] }
  0x9d   :  { %v155_v51 = vpop.permute.xlu0 %154  ;;  %v165_v52 = vadd.f32 %v160_v50, %v137_v48 }
  0x9e   :  { %v164_v53 = vadd.f32 %v155_v51, %v136_v49  ;;  %v1154_v54 = vpack.c.bf16 %v167_v46, %v166_v47  ;;  %v718_v46 = vld [vmem:[%s1571_s14] sm:$0xff]  ;;  %v516_v51 = vld [vmem:[%s1572_s12 + $0x28] sm:$0xff] }
  0x9f   :  { %v169_v55 = vmax.f32 %v165_v52, 0.0  ;;  %v515_v52 = vld [vmem:[%s1572_s12 + $0x20] sm:$0xff] }
  0xa0   :  { %v168_v56 = vmax.f32 %v164_v53, 0.0  ;;  %1155 = vmatprep.subr.bf16.mxu0 %v1154_v54  ;;  %v186_v63 = vpop.permute.xlu1 %185 }
  0xa1   :  { %1157 = vmatpush3.bf16.msra.mxu0 %v1154_v54  ;;  %v181_v62 = vpop.permute.xlu0 %180 }
  0xa2   :  { %v1158_v57 = vpack.c.bf16 %v169_v55, %v168_v56 }
  0xa4   :  { %1159 = vmatprep.subr.bf16.mxu0 %v1158_v57  ;;  %v196_v7 = vpop.permute.xlu1 %195 }
  0xa5   :  { %1161 = vmatpush3.bf16.msra.mxu0 %v1158_v57  ;;  %v191_v5 = vpop.permute.xlu0 %190  ;;  %v518_v57 = vld [vmem:[%s1572_s12 + $0x38] sm:$0xff] }
  0xa8   :  { %1082 = vmatmul.mubr.msk.f32.vlgmr.msra.gmra.mrb[0].mxu0 %vm198_vm0, %v171_v58 }
  0xa9   :  { %1084 = vmatprep.mubr.msk.f32.mxu0 %vm198_vm0, %v172_v59  ;;  %v517_v59 = vld [vmem:[%s1572_s12 + $0x30] sm:$0xff] }
  0xac   :  { %1085 = vmatmul.mubr.msk.f32.gmra.mrb[2].mxu0 %vm198_vm0, %v173_v60 }
  0xad   :  { %1117 = vmatprep.mubr.msk.f32.mxu0 %vm198_vm0, %v503_v20 }
 0x17b   :  { %v1083_v0 = vpop.f32.mrb[0].mxu0 }
 0x17c   :  { %v277_v1 = vpop.f32.mrb[1].mxu0  ;;  %v283_v3 = vadd.f32 %v1083_v0, %v186_v63 }
 0x17d   :  { %v278_v2 = vadd.f32 %v277_v1, %v181_v62 }
 0x17f   :  { %v1086_v4 = vpop.f32.mrb[2].mxu0  ;;  %1089 = vmatprep.mubr.msk.f32.mxu1 %vm296_vm1, %v278_v2 }
 0x180   :  { %v287_v6 = vpop.f32.mrb[3].mxu0  ;;  %1090 = vmatmul.mubr.msk.f32.vlgmr.msra.gmra.mrb[0].mxu1 %vm296_vm1, %v283_v3  ;;  %v293_v9 = vadd.f32 %v1086_v4, %v196_v7 }
 0x181   :  { %v288_v8 = vadd.f32 %v287_v6, %v191_v5 }
 0x183   :  { %1092 = vmatprep.mubr.msk.f32.mxu1 %vm296_vm1, %v288_v8 }
 0x184   :  { %1093 = vmatmul.mubr.msk.f32.gmra.mrb[2].mxu1 %vm296_vm1, %v293_v9 }
 0x185   :  { %1103 = vmatprep.mubr.msk.f32.mxu1 %vm198_vm0, %v394_v10 }
 0x253   :  { %v1091_v11 = vpop.f32.mrb[0].mxu1 }
 0x254   :  { %v375_v12 = vpop.f32.mrb[1].mxu1 }
 0x255   :  { %v1162_v13 = vpack.c.bf16 %v1091_v11, %v375_v12 }
 0x257   :  { %v1094_v14 = vpop.f32.mrb[2].mxu1  ;;  %1163 = vmatprep.subr.bf16.mxu1 %v1162_v13 }
 0x258   :  { %v385_v15 = vpop.f32.mrb[3].mxu1  ;;  %1165 = vmatpush3.bf16.msra.mxu1 %v1162_v13 }
 0x259   :  { %v1166_v16 = vpack.c.bf16 %v1094_v14, %v385_v15 }
 0x25b   :  { %1167 = vmatprep.subr.bf16.mxu1 %v1166_v16 }
 0x25c   :  { %1169 = vmatpush3.bf16.msra.mxu1 %v1166_v16 }
 0x25f   :  { %1104 = vmatmul.mubr.msk.f32.vlgmr.msra.gmra.mrb[4].mxu1 %vm198_vm0, %v395_v17 }
 0x260   :  { %1106 = vmatprep.mubr.msk.f32.mxu1 %vm198_vm0, %v396_v18 }
 0x263   :  { %1107 = vmatmul.mubr.msk.f32.gmra.mrb[6].mxu1 %vm198_vm0, %v397_v19 }
 0x264   :  { %1137 = vmatprep.mubr.msk.f32.mxu1 %vm198_vm0, %v718_v46 }
 0x332   :  { %v1105_v23 = vpop.f32.mrb[4].mxu1 }
 0x333   :  { %v486_v24 = vadd.f32 %v1105_v23, %v399_v21  ;;  %v480_v25 = vpop.f32.mrb[5].mxu1 }
 0x334   :  { %v481_v26 = vadd.f32 %v480_v25, %v398_v22 }
 0x335   :  { %v500_v28 = vmax.f32 %v486_v24, 0.0 }
 0x336   :  { %v499_v30 = vmax.f32 %v481_v26, 0.0  ;;  %v1108_v31 = vpop.f32.mrb[6].mxu1 }
 0x337   :  { %v496_v32 = vadd.f32 %v1108_v31, %v401_v27  ;;  %v490_v33 = vpop.f32.mrb[7].mxu1 }
 0x338   :  { %v1170_v34 = vpack.c.bf16 %v500_v28, %v499_v30  ;;  %v491_v35 = vadd.f32 %v490_v33, %v400_v29  ;;  %v512_v28 = vld [vmem:[%s1572_s12 + $0x8] sm:$0xff]  ;;  %v709_v30 = vstv %s1573_s0 }
 0x339   :  { %v502_v36 = vmax.f32 %v496_v32, 0.0  ;;  %v511_v32 = vld [vmem:[%s1572_s12] sm:$0xff] }
 0x33a   :  { %v501_v37 = vmax.f32 %v491_v35, 0.0  ;;  %1171 = vmatprep.subr.bf16.mxu0 %v1170_v34 }
 0x33b   :  { %1173 = vmatpush3.bf16.msra.mxu0 %v1170_v34 }
 0x33c   :  { %v1174_v38 = vpack.c.bf16 %v502_v36, %v501_v37 }
 0x33e   :  { %1175 = vmatprep.subr.bf16.mxu0 %v1174_v38 }
 0x33f   :  { %1177 = vmatpush3.bf16.msra.mxu0 %v1174_v38 }
 0x342   :  { %1118 = vmatmul.mubr.msk.f32.vlgmr.msra.gmra.mrb[4].mxu0 %vm198_vm0, %v504_v39 }
 0x343   :  { %1120 = vmatprep.mubr.msk.f32.mxu0 %vm198_vm0, %v505_v40 }
 0x346   :  { %1121 = vmatmul.mubr.msk.f32.gmra.mrb[6].mxu0 %vm198_vm0, %v506_v41 }
 0x347   :  { %1123 = vmatprep.mubr.msk.f32.mxu0 %vm198_vm0, %v507_v42 }
 0x34a   :  { %1124 = vmatmul.mubr.msk.f32.gmra.mrb[8].mxu0 %vm198_vm0, %v508_v43 }
 0x34b   :  { %1126 = vmatprep.mubr.msk.f32.mxu0 %vm198_vm0, %v509_v44 }
 0x34e   :  { %1127 = vmatmul.mubr.msk.f32.gmra.mrb[10].mxu0 %vm198_vm0, %v510_v45 }
 0x415   :  { %v1465_v47 = vpop.f32.mrb[4].mxu0 }
 0x416   :  { %v1467_v48 = vpop.f32.mrb[5].mxu0  ;;  %v615_v44 = vadd.f32 %v1465_v47, %v512_v28 }
 0x417   :  { %v610_v45 = vadd.f32 %v1467_v48, %v511_v32  ;;  %v841_v32 = vpop.permute.xlu1 %840 }
 0x419   :  { %v1469_v49 = vpop.f32.mrb[6].mxu0 }
 0x41a   :  { %v1471_v50 = vpop.f32.mrb[7].mxu0 }
 0x41d   :  { %v1125_v53 = vpop.f32.mrb[8].mxu0 }
 0x41e   :  { %v1479_v54 = vadd.f32 %v1125_v53, %v516_v51  ;;  %v629_v55 = vpop.f32.mrb[9].mxu0 }
 0x41f   :  { %v1481_v56 = vadd.f32 %v629_v55, %v515_v52 }
 0x420   :  { %v653_v58 = vand.u32 2147483647, %v1479_v54  ;;  %v649_v29 = vmax.f32 %v1479_v54, 0.0 }
 0x421   :  { %v652_v60 = vand.u32 2147483647, %v1481_v56  ;;  %v1128_v61 = vpop.f32.mrb[10].mxu0  ;;  %v648_v41 = vmax.f32 %v1481_v56, 0.0  ;;  %v514_v56 = vld [vmem:[%s1572_s12 + $0x18] sm:$0xff] }
 0x422   :  { %v657_v62 = vsub.f32 0.0, %v653_v58  ;;  %v1491_v63 = vadd.f32 %v1128_v61, %v518_v57  ;;  %v639_v0 = vpop.f32.mrb[11].mxu0 }
 0x423   :  { %v656_v1 = vsub.f32 0.0, %v652_v60  ;;  %v1493_v2 = vadd.f32 %v639_v0, %v517_v59 }
 0x424   :  { %v662_v3 = vmul.f32 1.442695, %v657_v62  ;;  %v655_v4 = vand.u32 2147483647, %v1491_v63  ;;  %v651_v54 = vmax.f32 %v1491_v63, 0.0  ;;  %v513_v62 = vld [vmem:[%s1572_s12 + $0x10] sm:$0xff] }
 0x425   :  { %v660_v5 = vmul.f32 1.442695, %v656_v1  ;;  %v654_v6 = vand.u32 2147483647, %v1493_v2  ;;  %v650_v48 = vmax.f32 %v1493_v2, 0.0 }
 0x426   :  { %1199 = vpow2.f32 %v662_v3  ;;  %v659_v7 = vsub.f32 0.0, %v655_v4 }
 0x427   :  { %1201 = vpow2.f32 %v660_v5  ;;  %v658_v8 = vsub.f32 0.0, %v654_v6  ;;  %v625_v5 = vadd.f32 %v1469_v49, %v514_v56  ;;  %v720_v49 = vld [vmem:[%s1571_s14 + $0x10] sm:$0xff] }
 0x428   :  { %v666_v9 = vmul.f32 1.442695, %v659_v7  ;;  %v620_v7 = vadd.f32 %v1471_v50, %v513_v62  ;;  %v721_v50 = vld [vmem:[%s1571_s14 + $0x18] sm:$0xff] }
 0x429   :  { %v664_v10 = vmul.f32 1.442695, %v658_v8 }
 0x42a   :  { %1203 = vpow2.f32 %v666_v9 }
 0x42b   :  { %1205 = vpow2.f32 %v664_v10 }
 0x430   :  { %v1200_v11 = vpop.eup %1199 }
 0x431   :  { %v1202_v12 = vpop.eup %1201  ;;  %v677_v13 = vadd.f32 1.0, %v1200_v11  ;;  %v680_v18 = vmul.f32 -0.5, %v1200_v11  ;;  %v683_v22 = vand.u32 2147483647, %v1200_v11 }
 0x432   :  { %v668_v14 = vadd.f32 1.0, %v1202_v12  ;;  %v671_v20 = vmul.f32 -0.5, %v1202_v12  ;;  %v674_v26 = vand.u32 2147483647, %v1202_v12 }
 0x433   :  { %1207 = vlog2.f32 %v677_v13  ;;  %v681_v21 = vadd.f32 1.0, %v680_v18  ;;  %vm684_vm2 = vcmp.lt.f32.partialorder %v683_v22, 0.0004427343  ;;  %v723_v13 = vld [vmem:[%s1574_s15 + $0x8] sm:$0xff] }
 0x434   :  { %v1204_v15 = vpop.eup %1203  ;;  %1209 = vlog2.f32 %v668_v14  ;;  %v672_v24 = vadd.f32 1.0, %v671_v20  ;;  %vm675_vm3 = vcmp.lt.f32.partialorder %v674_v26, 0.0004427343  ;;  %v722_v14 = vld [vmem:[%s1574_s15] sm:$0xff]  ;;  %v724_v20 = vld [vmem:[%s1574_s15 + $0x10] sm:$0xff] }
 0x435   :  { %v1206_v16 = vpop.eup %1205  ;;  %v695_v17 = vadd.f32 1.0, %v1204_v15  ;;  %v698_v23 = vmul.f32 -0.5, %v1204_v15  ;;  %v682_v34 = vmul.f32 %v1200_v11, %v681_v21  ;;  %v701_v38 = vand.u32 2147483647, %v1204_v15 }
 0x436   :  { %v686_v19 = vadd.f32 1.0, %v1206_v16  ;;  %v689_v25 = vmul.f32 -0.5, %v1206_v16  ;;  %v673_v37 = vmul.f32 %v1202_v12, %v672_v24  ;;  %v692_v42 = vand.u32 2147483647, %v1206_v16  ;;  %v719_v12 = vld [vmem:[%s1571_s14 + $0x8] sm:$0xff] }
 0x437   :  { %1211 = vlog2.f32 %v695_v17  ;;  %v699_v35 = vadd.f32 1.0, %v698_v23  ;;  %vm702_vm4 = vcmp.lt.f32.partialorder %v701_v38, 0.0004427343 }
 0x438   :  { %1213 = vlog2.f32 %v686_v19  ;;  %v690_v39 = vadd.f32 1.0, %v689_v25  ;;  %vm693_vm5 = vcmp.lt.f32.partialorder %v692_v42, 0.0004427343  ;;  %v725_v19 = vld [vmem:[%s1574_s15 + $0x18] sm:$0xff] }
 0x439   :  { %v700_v57 = vmul.f32 %v1204_v15, %v699_v35  ;;  %v851_v35 = vpop.permute.xlu1 %850 }
 0x43a   :  { %v691_v60 = vmul.f32 %v1206_v16, %v690_v39 }
 0x43d   :  { %v1208_v27 = vpop.eup %1207 }
 0x43e   :  { %v1210_v31 = vpop.eup %1209  ;;  %v679_v33 = vmul.f32 0.6931472, %v1208_v27 }
 0x43f   :  { %v670_v36 = vmul.f32 0.6931472, %v1210_v31  ;;  %v1223_v31 = vmov 0.0  }
 0x440   :  { %v685_v40 = vsel %vm684_vm2, %v682_v34, %v679_v33  ;;  %v836_v33 = vpop.permute.xlu0 %835  ;;  %v1025_v34 = vld [vmem:[%s1576_s3] ss:$0 sm:$0xff] }
 0x441   :  { %v1212_v43 = vpop.eup %1211  ;;  %v705_v46 = vadd.f32 %v685_v40, %v649_v29  ;;  %v676_v51 = vsel %vm675_vm3, %v673_v37, %v670_v36  ;;  %v896_v29 = vld [vmem:[%s1575_s17] sm:$0x3]  ;;  %v860_v37 = vmul.f32 %v1025_v34, %v841_v32  ;;  %v859_v38 = vmul.f32 %v1025_v34, %v836_v33 }
 0x442   :  { %v1214_v52 = vpop.eup %1213  ;;  %v704_v53 = vadd.f32 %v676_v51, %v648_v41  ;;  %v697_v55 = vmul.f32 0.6931472, %v1212_v43  ;;  %v862_v43 = vmul.f32 %v1025_v34, %v851_v35 }
 0x443   :  { %v711_v58 = vmul.f32 %v709_v30, %v705_v46  ;;  %v688_v59 = vmul.f32 0.6931472, %v1214_v52 }
 0x444   :  { %v710_v61 = vmul.f32 %v709_v30, %v704_v53  ;;  %v703_v47 = vsel %vm702_vm4, %v700_v57, %v697_v55  ;;  %v846_v36 = vpop.permute.xlu0 %845 }
 0x445   :  { %v707_v63 = vadd.f32 %v703_v47, %v651_v54  ;;  %v694_v0 = vsel %vm693_vm5, %v691_v60, %v688_v59  ;;  %v715_v1 = vadd.f32 %v711_v58, %v615_v44  ;;  %v895_v60 = vld [vmem:[%s1577_s16] sm:$0x3] }
 0x446   :  { %v706_v3 = vadd.f32 %v694_v0, %v650_v48  ;;  %v714_v4 = vadd.f32 %v710_v61, %v610_v45  ;;  %v861_v45 = vmul.f32 %v1025_v34, %v846_v36 }
 0x447   :  { %v713_v6 = vmul.f32 %v709_v30, %v707_v63 }
 0x448   :  { %v712_v8 = vmul.f32 %v709_v30, %v706_v3  ;;  %v1178_v9 = vpack.c.bf16 %v715_v1, %v714_v4  ;;  %v1221_v30 = vmov 0.0|0.0  }
 0x449   :  { %v717_v10 = vadd.f32 %v713_v6, %v625_v5 }
 0x44a   :  { %1179 = vmatprep.subr.bf16.mxu1 %v1178_v9  ;;  %v716_v2 = vadd.f32 %v712_v8, %v620_v7 }
 0x44b   :  { %1181 = vmatpush3.bf16.msra.mxu1 %v1178_v9 }
 0x44c   :  { %v1182_v11 = vpack.c.bf16 %v717_v10, %v716_v2 }
 0x44e   :  { %1183 = vmatprep.subr.bf16.mxu1 %v1182_v11 }
 0x44f   :  { %1185 = vmatpush3.bf16.msra.mxu1 %v1182_v11 }
 0x450   :  { %1186 = vmatprep.subr.bf16.mxu1 %v1221_v30 }
 0x452   :  { %1138 = vmatmul.mubr.msk.f32.vlgmr.msra.gmra.mrb[8].mxu1 %vm198_vm0, %v719_v12 }
 0x453   :  { %1140 = vmatprep.mubr.msk.f32.mxu1 %vm198_vm0, %v720_v49 }
 0x456   :  { %1141 = vmatmul.mubr.msk.f32.gmra.mrb[10].mxu1 %vm198_vm0, %v721_v50 }
 0x457   :  { %1151 = vmatprep.mubr.msk.f32.mxu1 %vm1222_vm7, %v1223_v31 }
 0x525   :  { %v1139_v15 = vpop.f32.mrb[8].mxu1 }
 0x526   :  { %v810_v16 = vadd.f32 %v1139_v15, %v723_v13  ;;  %v804_v17 = vpop.f32.mrb[9].mxu1 }
 0x527   :  { %v805_v18 = vadd.f32 %v804_v17, %v722_v14 }
 0x528   :  { %825 = vst.msk [vmem:[#allocation2 + $0x8] sm:$0xff] %vm823_vm6, %v810_v16 }
 0x529   :  { %824 = vst.msk [vmem:[#allocation2] sm:$0xff] %vm823_vm6, %v805_v18  ;;  %v1142_v21 = vpop.f32.mrb[10].mxu1 }
 0x52a   :  { %v820_v22 = vadd.f32 %v1142_v21, %v725_v19  ;;  %v814_v23 = vpop.f32.mrb[11].mxu1 }
 0x52b   :  { %v815_v24 = vadd.f32 %v814_v23, %v724_v20 }
 0x52c   :  { %827 = vst.msk [vmem:[#allocation2 + $0x18] sm:$0xff] %vm823_vm6, %v820_v22 }
 0x52d   :  { %826 = vst.msk [vmem:[#allocation2 + $0x10] sm:$0xff] %vm823_vm6, %v815_v24 }
 0x52f   :  { %v864_v25 = vld [vmem:[#allocation2 + $0x8] sm:$0xff] }
 0x530   :  { %874 = vperm.xlu1 %1198, %v864_v25   ;;  %v863_v26 = vld [vmem:[#allocation2] sm:$0xff] }
 0x531   :  { %869 = vperm.xlu0 %1197, %v863_v26  }
 0x533   :  { %v866_v27 = vld [vmem:[#allocation2 + $0x18] sm:$0xff] }
 0x534   :  { %884 = vperm.xlu1 %1198, %v866_v27   ;;  %v865_v28 = vld [vmem:[#allocation2 + $0x10] sm:$0xff] }
 0x535   :  { %879 = vperm.xlu0 %1197, %v865_v28  }
 0x539   :  { %899 = vperm.xlu0 %1197, %v896_v29  }
 0x5af   :  { %v875_v39 = vpop.permute.xlu1 %874 }
 0x5b0   :  { %v888_v40 = vadd.f32 %v875_v39, %v860_v37  ;;  %v870_v41 = vpop.permute.xlu0 %869 }
 0x5b1   :  { %v887_v42 = vadd.f32 %v870_v41, %v859_v38 }
 0x5b2   :  { %v892_v44 = vmax.f32 %v888_v40, 0.0 }
 0x5b3   :  { %v891_v46 = vmax.f32 %v887_v42, 0.0  ;;  %v885_v51 = vpop.permute.xlu1 %884 }
 0x5b4   :  { %v890_v52 = vadd.f32 %v885_v51, %v862_v43  ;;  %v880_v53 = vpop.permute.xlu0 %879 }
 0x5b5   :  { %v1187_v54 = vpack.c.bf16 %v892_v44, %v891_v46  ;;  %v889_v55 = vadd.f32 %v880_v53, %v861_v45 }
 0x5b6   :  { %v894_v57 = vmax.f32 %v890_v52, 0.0 }
 0x5b7   :  { %v893_v58 = vmax.f32 %v889_v55, 0.0  ;;  %1188 = vmatpush3.bf16.msra.mxu1 %v1187_v54 }
 0x5b8   :  { %1189 = vmatprep.subr.bf16.mxu1 %v1221_v30  ;;  %v900_v56 = vpop.permute.xlu0 %899 }
 0x5b9   :  { %v1190_v59 = vpack.c.bf16 %v894_v57, %v893_v58 }
 0x5bb   :  { %1191 = vmatpush3.bf16.msra.mxu1 %v1190_v59 }
 0x5be   :  { %1152 = vmatmul.mubr.msk.f32.vlgmr.msra.gmra.mrb[12].mxu1 %vm198_vm0, %v895_v60 }
 0x691   :  { %v972_v61 = vpop.f32.mrb[12].mxu1 }
 0x692   :  { %v973_v47 = vadd.f32 %v972_v61, %v900_v56  ;;  %v1153_v48 = vpop.f32.mrb[13].mxu1 }
 0x694   :  { %977 = vst.msk [vmem:[%s1578_s18] sm:$0x1] %vm976_vm8, %v973_v47  ;;  %v979_v62 = vand.u32 2147483647, %v973_v47  ;;  %v978_v10 = vmax.f32 %v973_v47, 0.0 }
 0x696   :  { %v980_v63 = vsub.f32 0.0, %v979_v62 }
 0x698   :  { %v981_v0 = vmul.f32 1.442695, %v980_v63 }
 0x69a   :  { %1215 = vpow2.f32 %v981_v0 }
 0x6a4   :  { %v1216_v1 = vpop.eup %1215 }
 0x6a5   :  { %v983_v3 = vadd.f32 1.0, %v1216_v1  ;;  %v986_v4 = vmul.f32 -0.5, %v1216_v1  ;;  %v989_v6 = vand.u32 2147483647, %v1216_v1 }
 0x6a7   :  { %1217 = vlog2.f32 %v983_v3  ;;  %v987_v5 = vadd.f32 1.0, %v986_v4  ;;  %vm990_vm9 = vcmp.lt.f32.partialorder %v989_v6, 0.0004427343 }
 0x6a9   :  { %v988_v9 = vmul.f32 %v1216_v1, %v987_v5 }
 0x6b1   :  { %v1218_v7 = vpop.eup %1217 }
 0x6b2   :  { %v985_v8 = vmul.f32 0.6931472, %v1218_v7 }
 0x6b4   :  { %v991_v2 = vsel %vm990_vm9, %v988_v9, %v985_v8 }
 0x6b5   :  { %v992_v11 = vadd.f32 %v991_v2, %v978_v10 }
 0x6b7   :  { %994 = vst.msk [vmem:[%s1578_s18] sm:$0x2] %vm993_vm10, %v992_v11 }

</bundles_post_ra>
